<compile_context>
chip_gen: v7x
topology: tpu7x:2x2x1
jax: 0.10.0
libtpu: 0.0.40
codegen_flags: <defaults>
</compile_context>

<pallas_src>
import jax
import jax.numpy as jnp
from jax.experimental import pallas as pl
from jax.experimental.pallas import tpu as pltpu


_MIN_ROW_BLOCKS = 8  # enough grid steps for pipelining + both v7x TensorCores


def _gene_degradation_kernel(beta_ref, x_ref, o_ref):
    # relu(beta) in beta's own dtype, then promote to the output dtype for the
    # multiply — matches PyTorch's type promotion of relu(beta) * x.
    beta = jnp.maximum(beta_ref[...], 0).astype(o_ref.dtype)   # (1, col_tile)
    o_ref[...] = beta * x_ref[...].astype(o_ref.dtype)


def _vmem_capacity_bytes():
    """Physical VMEM per TensorCore (v5e/v6e: 128 MiB, v7x: 64 MiB)."""
    try:
        cap = getattr(pltpu.get_tpu_info(), "vmem_capacity_bytes", None)
        if cap:
            return int(cap)
    except Exception:
        pass
    return 64 << 20  # conservative fallback (v7x per-TC VMEM)


def _choose_tiles(N, G, itemsize, target_block_bytes):
    """Pick (row_tile, col_tile) so one x block is ~target_block_bytes."""
    sub = max(8, 32 // itemsize)  # sublane packing granularity for this dtype
    # Lane (gene) axis: prefer the full G (fully contiguous HBM DMA per block)
    # whenever one sublane-group of full rows fits the budget; only tile G in
    # multiples of 128 (lane-dense stores) as a last resort.
    if G <= 128 or sub * G * itemsize <= target_block_bytes:
        col_tile = G
    else:
        col_tile = max(128, (target_block_bytes // (sub * itemsize * 128)) * 128)
        col_tile = min(col_tile, (G // 128) * 128)
    # Row (cell) axis: largest multiple of `sub` within the budget...
    rows = max(sub, target_block_bytes // (col_tile * itemsize))
    row_tile = max(sub, (rows // sub) * sub)
    # ...but keep >= _MIN_ROW_BLOCKS row blocks for mid/large N so the DMA
    # pipeline has steps to overlap and v7x's two TensorCores are both busy.
    if N >= _MIN_ROW_BLOCKS * sub:
        cap = max(sub, ((N // _MIN_ROW_BLOCKS) // sub) * sub)
        row_tile = min(row_tile, cap)
    if row_tile >= N:
        row_tile = N  # full-dim block is always a legal block shape
    return row_tile, col_tile


def gene_degradation(x, beta, *, target_block_bytes=None, donate_x=False):
    """relu(beta) * x  — x: (N, G), beta: (G,)."""
    N, G = x.shape
    assert beta.shape == (G,)

    out_dtype = jnp.result_type(x.dtype, beta.dtype)
    x_item = jnp.dtype(x.dtype).itemsize
    o_item = jnp.dtype(out_dtype).itemsize
    b_item = jnp.dtype(beta.dtype).itemsize
    itemsize = max(x_item, o_item)

    # Per-generation VMEM budget: 3/4 of physical capacity usable for this
    # kernel's double-buffered x/out blocks (+ headroom for compiler scratch).
    phys = _vmem_capacity_bytes()
    ceiling = (phys * 3) // 4
    headroom = 4 << 20
    max_block_bytes = max(1 << 20, (ceiling - headroom) // 4)
    if target_block_bytes is None:
        # ~16 MiB blocks on v5e/v6e (128 MiB VMEM), ~10.5 MiB on v7x (64 MiB).
        target_block_bytes = min(16 << 20, phys // 6)
    target_block_bytes = min(int(target_block_bytes), max_block_bytes)

    row_tile, col_tile = _choose_tiles(N, G, itemsize, target_block_bytes)
    n_row = pl.cdiv(N, row_tile)
    n_col = pl.cdiv(G, col_tile)

    beta2d = beta.reshape(1, G)

    # Scoped-VMEM limit from the real double-buffered need (never above the
    # per-generation ceiling; the block-budget clamp above guarantees it fits).
    need = (2 * row_tile * col_tile * (x_item + o_item)
            + 2 * col_tile * b_item + headroom)
    vmem_limit = int(min(max(need, 16 << 20), ceiling))

    # Donating x (aliasing it to the output) is only legal when dtypes match.
    aliases = {1: 0} if (donate_x and out_dtype == jnp.dtype(x.dtype)) else {}

    # Grid: gene (col) axis outermost, row axis innermost, so beta's block
    # index is constant along the inner loop and its tile is not re-fetched.
    return pl.pallas_call(
        _gene_degradation_kernel,
        out_shape=jax.ShapeDtypeStruct((N, G), out_dtype),
        grid_spec=pltpu.PrefetchScalarGridSpec(
            num_scalar_prefetch=0,
            grid=(n_col, n_row),
            in_specs=[
                # beta: one lane-tile, constant across the inner (row) loop.
                pl.BlockSpec((1, col_tile), lambda j, i: (0, j)),
                # x: one (row_tile, col_tile) tile per grid step.
                pl.BlockSpec((row_tile, col_tile), lambda j, i: (i, j)),
            ],
            out_specs=pl.BlockSpec((row_tile, col_tile), lambda j, i: (i, j)),
        ),
        compiler_params=pltpu.CompilerParams(
            dimension_semantics=("parallel", "parallel"),
            vmem_limit_bytes=vmem_limit,
        ),
        cost_estimate=pl.CostEstimate(
            flops=N * G,
            transcendentals=0,
            bytes_accessed=N * G * (x_item + o_item) + G * b_item,
        ),
        input_output_aliases=aliases,
    )(beta2d, x)


if __name__ == "__main__":
    key = jax.random.PRNGKey(0)
    k_x, k_b, k_x2, k_b2, k_x3, k_b3 = jax.random.split(key, 6)

    def ref_fn(x, beta):
        return jnp.maximum(beta, 0.0)[None, :] * x

    # 1) Small demo consistent with the module: batch (cells) x output_size
    #    (genes). beta init = init_beta * ones, perturbed to exercise relu().
    N, G = 16, 256
    x = jax.random.normal(k_x, (N, G), dtype=jnp.float32)
    init_beta = 1.0
    beta = init_beta * jnp.ones((G,), jnp.float32) \
        + jax.random.normal(k_b, (G,), jnp.float32)
    out = jax.block_until_ready(gene_degradation(x, beta))
    assert out.shape == (N, G)
    assert jnp.allclose(out, ref_fn(x, beta), atol=1e-6, rtol=1e-6)

    # 2) Ragged, gene-tiled path: tiny budget forces col tiling, the swapped
    #    grid order (beta reused along the inner row axis) and a masked last
    #    row block — the path large (N, G) problems with huge G would take.
    N2, G2 = 1003, 384
    x2 = jax.random.normal(k_x2, (N2, G2), dtype=jnp.float32)
    beta2 = jax.random.normal(k_b2, (G2,), dtype=jnp.float32)
    out2 = jax.block_until_ready(
        gene_degradation(x2, beta2, target_block_bytes=4 * 1024))
    assert jnp.allclose(out2, ref_fn(x2, beta2), atol=1e-6, rtol=1e-6)

    # 3) Default (large-block) path: full-G contiguous blocks, min-row-blocks
    #    floor for pipelining / megacore, and the donated-x (aliased) variant.
    N3, G3 = 2048, 512
    x3 = jax.random.normal(k_x3, (N3, G3), dtype=jnp.float32)
    beta3 = jax.random.normal(k_b3, (G3,), dtype=jnp.float32)
    ref3 = ref_fn(x3, beta3)
    out3 = jax.block_until_ready(gene_degradation(x3, beta3, donate_x=True))
    assert jnp.allclose(out3, ref3, atol=1e-6, rtol=1e-6)

    # TODO(synk): hinge_hook (clamping beta during backward) is a training-time
    # parameter hook, not part of the forward pass, so it is not implemented.
    print("KERNEL_OK")
</pallas_src>

<mosaic_0001>
module attributes {stable_mosaic.version = 11 : i64} {
  func.func @_gene_degradation_kernel(%arg0: i32, %arg1: i32, %arg2: memref<1x256xf32, #tpu.memory_space<vmem>>, %arg3: memref<16x256xf32, #tpu.memory_space<vmem>>, %arg4: memref<16x256xf32, #tpu.memory_space<vmem>>) attributes {dimension_semantics = [#tpu.dimension_semantics<parallel>, #tpu.dimension_semantics<parallel>], iteration_bounds = array<i64: 1, 1>, scalar_prefetch = 0 : i64, scratch_operands = 0 : i64, tpu.core_type = #tpu.core_type<tc>, window_params = [{transform_indices = @transform_0, window_bounds = array<i64: 1, 256>}, {transform_indices = @transform_1, window_bounds = array<i64: 16, 256>}, {transform_indices = @transform_2, window_bounds = array<i64: 16, 256>}]} {
    %c0 = arith.constant 0 : index
    %c0_0 = arith.constant 0 : index
    %0 = vector.load %arg2[%c0, %c0_0] : memref<1x256xf32, #tpu.memory_space<vmem>>, vector<1x256xf32>
    %cst = arith.constant 0.000000e+00 : f32
    %1 = vector.broadcast %cst : f32 to vector<1x256xf32>
    %2 = arith.maximumf %0, %1 : vector<1x256xf32>
    %c0_1 = arith.constant 0 : index
    %c0_2 = arith.constant 0 : index
    %3 = vector.load %arg3[%c0_1, %c0_2] : memref<16x256xf32, #tpu.memory_space<vmem>>, vector<16x256xf32>
    %4 = vector.broadcast %2 : vector<1x256xf32> to vector<16x256xf32>
    %5 = arith.mulf %4, %3 : vector<16x256xf32>
    %c0_3 = arith.constant 0 : index
    %c0_4 = arith.constant 0 : index
    %6 = vector.load %arg4[%c0_3, %c0_4] : memref<16x256xf32, #tpu.memory_space<vmem>>, vector<16x256xf32>
    tpu.vector_store %arg4[%c0_3, %c0_4], %5 {strides = array<i32>} : memref<16x256xf32, #tpu.memory_space<vmem>>, vector<16x256xf32>,
    return
  }
  func.func @transform_0(%arg0: i32, %arg1: i32) -> (i32, i32) {
    %c0_i32 = arith.constant 0 : i32
    %c0_i32_0 = arith.constant 0 : i32
    return %c0_i32, %arg0 : i32, i32
  }
  func.func @transform_1(%arg0: i32, %arg1: i32) -> (i32, i32) {
    %c0_i32 = arith.constant 0 : i32
    return %arg1, %arg0 : i32, i32
  }
  func.func @transform_2(%arg0: i32, %arg1: i32) -> (i32, i32) {
    %c0_i32 = arith.constant 0 : i32
    return %arg1, %arg0 : i32, i32
  }
}

</mosaic_0001>

<bundles_post_ra>
// kernel: tpu_custom_call.1
= control target key start
LH: loop header
LB: loop body
LE: loop exit
PB: predicated region body
PF: predicated region fallthrough
CT: control target
= control target key end

     0   :  { %7 = vsyncpa [#allocation3], 0  ;;  %s227_s0 = inlined_call_operand.hbm [shape: f32[1,256], index: 0, kind: input, shape index: {}]   ;;  %s228_s1 = inlined_call_operand.hbm [shape: f32[16,256], index: 1, kind: input, shape index: {}]   ;;  %s229_s2 = inlined_call_operand.hbm [shape: f32[16,256], index: 2, kind: output, shape index: {}]  }
   0x1   :  { %8 = vsyncpa [#allocation6], 0 }
   0x2   :  { %9 = vsyncpa [#allocation4], 0  ;;  %s158_s9 = smov [#allocation2]   ;;  %s159_s11 = smov [#allocation5]  }
   0x3   :  { %s16_s10 = sshll.u32 %s158_s9, 4  ;;  %s25_s12 = sshll.u32 %s159_s11, 4  ;;  %s17_s10 = int_to_ptr.vmem [resolvable:$true] %s16_s10  ;;  %s178_s12 = int_to_ptr.vmem [resolvable:$true] %s25_s12 }
   0x4   :  { %s86_s15 = scalar_lea.hbm %s227_s0, 32 }
   0x5   :  { %p87_p0 = scmp.ne.s32.totalorder %s227_s0, %s86_s15  ;;  %p90_p1 = scmp.lt.u32.totalorder %s86_s15, %s227_s0 }
   0x7   :  { %p92_p2 = pnand %p90_p1, %p87_p0 }
   0x9   :  { %95 = shalt.err (!%p92_p2)
}
   0xa   :  { %s96_s20 = scalar_lea.vmem %s17_s10, 32  ;;  %p101_p4 = scmp.lt.s32.totalorder %s17_s10, %s17_s10 }
   0xb   :  { %p97_p3 = scmp.ne.s32.totalorder %s17_s10, %s96_s20  ;;  %p102_p5 = scmp.lt.s32.totalorder %s96_s20, %s96_s20 }
   0xd   :  { %p103_p6 = por %p102_p5, %p101_p4 }
   0xf   :  { %p104_p7 = pnand %p103_p6, %p97_p3 }
  0x11   :  { %107 = shalt.err (!%p104_p7)
}
  0x12   :  { %19 = dma.hbm_to_vmem [thread:$0]  %s227_s0, 32, %s17_s10, [#allocation3]  }
  0x13   :  { %s108_s25 = scalar_lea.hbm %s228_s1, 512 }
  0x14   :  { %p109_p8 = scmp.ne.s32.totalorder %s228_s1, %s108_s25  ;;  %p112_p9 = scmp.lt.u32.totalorder %s108_s25, %s228_s1 }
  0x16   :  { %p114_p10 = pnand %p112_p9, %p109_p8 }
  0x18   :  { %117 = shalt.err (!%p114_p10)
}
  0x19   :  { %s118_s30 = scalar_lea.vmem %s178_s12, 512  ;;  %p123_p12 = scmp.lt.s32.totalorder %s178_s12, %s178_s12 }
  0x1a   :  { %p119_p11 = scmp.ne.s32.totalorder %s178_s12, %s118_s30  ;;  %p124_p13 = scmp.lt.s32.totalorder %s118_s30, %s118_s30 }
  0x1c   :  { %p125_p0 = por %p124_p13, %p123_p12 }
  0x1e   :  { %p126_p1 = pnand %p125_p0, %p119_p11 }
  0x20   :  { %129 = shalt.err (!%p126_p1)
}
  0x21   :  { %s160_s0 = smov 256   ;;  %s161_s3 = smov 16  }
  0x22   :  { %31 = dma.hbm_to_vmem [thread:$0]  %s228_s1, 512, %s178_s12, [#allocation6], %s160_s0, %s160_s0, %s161_s3  }
  0x23   :  { %152 = dma.done.wait [#allocation3], 32  }
  0x24   :  { %153 = vsyncadd [#allocation3], 4294967264 }
  0x25   :  { %154 = dma.done.wait [#allocation6], 512  }
  0x26   :  { %155 = vsyncadd [#allocation6], 4294966784  ;;  %v45_v0 = vlaneseq  ;;  %v38_v4 = vld [vmem:[#allocation2] sm:$0x3]  ;;  %v40_v6 = vld [vmem:[#allocation5] sm:$0xff]  ;;  %s162_s6 = smov [#allocation7]  }
  0x27   :  { %v39_v5 = vmax.f32 %v38_v4, 0.0  ;;  %v41_v7 = vld [vmem:[#allocation5 + $0x8] sm:$0xff]  ;;  %v42_v8 = vld [vmem:[#allocation5 + $0x10] sm:$0xff]  ;;  %v43_v9 = vld [vmem:[#allocation5 + $0x18] sm:$0xff]  ;;  %s68_s7 = sshll.u32 %s162_s6, 4  ;;  %s69_s7 = int_to_ptr.vmem [resolvable:$true] %s68_s7 }
  0x28   :  { %v46_v1 = vshrl.u32 %v45_v0, 7  ;;  %s130_s1 = scalar_lea.vmem %s69_s7, 512  ;;  %p135_p3 = scmp.lt.s32.totalorder %s69_s7, %s69_s7 }
  0x29   :  { %p131_p2 = scmp.ne.s32.totalorder %s69_s7, %s130_s1  ;;  %p136_p4 = scmp.lt.s32.totalorder %s130_s1, %s130_s1 }
  0x2a   :  { %v47_v2 = vsub.s32 0, %v46_v1  ;;  %v51_v3 = vsub.s32 1, %v46_v1 }
  0x2b   :  { %p137_p5 = por %p136_p4, %p135_p3 }
  0x2c   :  { %v48_v10 = vrot.slane %v39_v5, %v47_v2  ;;  %v52_v11 = vrot.slane %v39_v5, %v51_v3 }
  0x2d   :  { %p138_p6 = pnand %p137_p5, %p131_p2 }
  0x2e   :  { %v55_v12 = vmul.f32 %v48_v10, %v40_v6  ;;  %v56_v13 = vmul.f32 %v52_v11, %v41_v7  ;;  %v57_v14 = vmul.f32 %v48_v10, %v42_v8  ;;  %v58_v15 = vmul.f32 %v52_v11, %v43_v9 }
  0x30   :  { %59 = vst [vmem:[#allocation7] sm:$0xff] %v55_v12  ;;  %60 = vst [vmem:[#allocation7 + $0x8] sm:$0xff] %v56_v13 }
  0x31   :  { %61 = vst [vmem:[#allocation7 + $0x10] sm:$0xff] %v57_v14  ;;  %62 = vst [vmem:[#allocation7 + $0x18] sm:$0xff] %v58_v15 }
  0x32   :  { %141 = shalt.err (!%p138_p6)
}
  0x33   :  { %s142_s10 = scalar_lea.hbm %s229_s2, 512 }
  0x34   :  { %p143_p7 = scmp.ne.s32.totalorder %s229_s2, %s142_s10  ;;  %p146_p8 = scmp.lt.u32.totalorder %s142_s10, %s229_s2 }
  0x36   :  { %p148_p9 = pnand %p146_p8, %p143_p7 }
  0x38   :  { %151 = shalt.err (!%p148_p9)
}
  0x39   :  { %74 = dma.vmem_to_hbm [thread:$0]  %s69_s7, 512, %s229_s2, [#allocation4], %s160_s0, %s160_s0, %s161_s3  }
  0x3a   :  { %156 = dma.done.wait [#allocation4], 512  }
  0x3b   :  { %157 = vsyncadd [#allocation4], 4294966784 }
  0x3c   :  { %78 = vsyncpa [#allocation3], 1 }
  0x3d   :  { %79 = vsyncpa [#allocation6], 1 }
  0x3e   :  { %80 = vsyncpa [#allocation4], 1 }

</bundles_post_ra>
